<compile_context>
chip_gen: v7x
topology: tpu7x:2x2x1
jax: 0.10.0
libtpu: 0.0.40
codegen_flags: <defaults>
</compile_context>

<pallas_src>
import functools

import jax
import jax.numpy as jnp
from jax.experimental import pallas as pl
from jax.experimental.pallas import tpu as pltpu


def _round_up(n, m):
    return pl.cdiv(n, m) * m


def _mix_hist_rank_kernel(x_ref, w_ref, b_ref, out_ref, *,
                          start_dim, inter_dim, end_dim):
    # x_ref: (tm, E) tile of rows in the input's native dtype.
    x = x_ref[...]
    tm, E = x.shape
    half = inter_dim - start_dim
    out_dim = E - half

    # gate = sigmoid(<x[:, start:end], w> + b)  -- Linear(in_dim -> 1) + Sigmoid.
    # Reduction stays on VPU/XLU (no MXU); logit math in f32; exact sigmoid.
    gate_in = x[:, start_dim:end_dim].astype(jnp.float32)        # (tm, in_dim)
    w = w_ref[...]                                               # (1, in_dim) f32
    logit = jnp.sum(gate_in * w, axis=-1, keepdims=True) + b_ref[0, 0]
    gate = jax.nn.sigmoid(logit)                                 # (tm, 1) f32

    # Per-output-column blend factor:
    #   j <  start_dim          -> 1     (pass-through head, x[:, j])
    #   start_dim <= j < inter  -> gate  (blend rank x[:, j] with hist x[:, j+half])
    #   j >= inter_dim          -> 0     (shifted tail, x[:, j+half] = x[:, end_dim + ...])
    col = jax.lax.broadcasted_iota(jnp.int32, (tm, out_dim), 1)
    gate_col = jnp.where(col < start_dim, 1.0,
                         jnp.where(col < inter_dim, gate, 0.0))  # (tm, out_dim) f32
    gate_col = gate_col.astype(x.dtype)

    head = x[:, :out_dim]          # candidate value x[:, j]
    tail = x[:, half:]             # candidate value x[:, j + half]  (width == out_dim)

    # mixed = hist + gate*(rank - hist); head/tail regions fall out of gate_col.
    out_ref[...] = (tail + gate_col * (head - tail)).astype(out_ref.dtype)


def mix_hist_rank(x, weight, bias, *, start_dim, end_dim,
                  target_step_bytes=4 * 1024 * 1024, tm=None):
    """x: [len, batch, E] (any float dtype); weight: [1, end_dim-start_dim]; bias: [1]."""
    L, B, E = x.shape
    in_dim = end_dim - start_dim
    assert 0 < in_dim and in_dim % 2 == 0, "end_dim - start_dim must be positive and even"
    assert 0 <= start_dim and end_dim <= E
    inter_dim = start_dim + in_dim // 2
    half = inter_dim - start_dim
    out_dim = E - half

    M = L * B
    x2d = x.reshape(M, E)                       # native dtype, no extra HBM pass
    dtype = x2d.dtype
    itemsize = jnp.dtype(dtype).itemsize
    pack = max(8, 32 // itemsize)               # sublane packing: 8 f32, 16 bf16

    # --- Tile-size selection ----------------------------------------------
    # (a) target bytes of in+out HBM traffic per grid step (amortize step overhead)
    io_bytes_per_row = (E + out_dim) * itemsize
    tm_target = max(pack, (target_step_bytes // io_bytes_per_row) // pack * pack)
    # (b) VMEM budget: double-buffered in/out tiles + f32 temps (gate_in, gate_col,
    #     head-tail diff) -- conservative so it fits v7x's 64 MiB VMEM per core.
    vmem_bytes_per_row = io_bytes_per_row * 2 + (in_dim + 3 * out_dim) * 4
    vmem_tile_budget = 24 * 1024 * 1024
    tm_vmem = max(pack, (vmem_tile_budget // vmem_bytes_per_row) // pack * pack)
    # (c) keep >= 2 grid steps when the data allows it (v7x megacore + pipelining)
    tm_two = max(pack, _round_up(pl.cdiv(M, 2), pack))
    # (d) never exceed the data
    tm_data = _round_up(M, pack)

    candidates = [c for c in (tm, tm_target, tm_vmem, tm_two, tm_data) if c]
    tm_eff = _round_up(max(pack, min(candidates)), pack)

    grid = (pl.cdiv(M, tm_eff),)                # ragged last block: no padding

    w2d = weight.reshape(1, in_dim).astype(jnp.float32)
    b2d = bias.reshape(1, 1).astype(jnp.float32)

    kernel = functools.partial(
        _mix_hist_rank_kernel,
        start_dim=start_dim, inter_dim=inter_dim, end_dim=end_dim)

    out2d = pl.pallas_call(
        kernel,
        out_shape=jax.ShapeDtypeStruct((M, out_dim), dtype),
        grid_spec=pltpu.PrefetchScalarGridSpec(
            num_scalar_prefetch=0,
            grid=grid,
            in_specs=[
                pl.BlockSpec((tm_eff, E), lambda i: (i, 0)),
                pl.BlockSpec((1, in_dim), lambda i: (0, 0)),
                pl.BlockSpec((1, 1), lambda i: (0, 0),
                             memory_space=pltpu.SMEM),
            ],
            out_specs=pl.BlockSpec((tm_eff, out_dim), lambda i: (i, 0)),
        ),
        compiler_params=pltpu.CompilerParams(
            dimension_semantics=("parallel",),
            vmem_limit_bytes=48 * 1024 * 1024),
    )(x2d, w2d, b2d)

    return out2d.reshape(L, B, out_dim)


def _reference(x, weight, bias, *, start_dim, end_dim):
    inter_dim = start_dim + (end_dim - start_dim) // 2
    rank = x[:, :, start_dim:inter_dim]
    hist = x[:, :, inter_dim:end_dim]
    gate_in = x[:, :, start_dim:end_dim]
    gate = jax.nn.sigmoid(
        jnp.einsum("lbd,od->lbo", gate_in, weight,
                   precision=jax.lax.Precision.HIGHEST) + bias)
    mixed = gate * rank + (1.0 - gate) * hist
    parts = []
    if start_dim > 0:
        parts.append(x[:, :, :start_dim])
    parts.append(mixed)
    if x.shape[2] - end_dim > 0:
        parts.append(x[:, :, end_dim:])
    return jnp.concatenate(parts, axis=2)


def _run_case(key, L, B, E, start_dim, end_dim):
    in_dim = end_dim - start_dim
    kx, kw, kb = jax.random.split(key, 3)
    x = jax.random.normal(kx, (L, B, E), dtype=jnp.float32)
    bound = 1.0 / (in_dim ** 0.5)
    weight = jax.random.uniform(kw, (1, in_dim), jnp.float32, -bound, bound)
    bias = jax.random.uniform(kb, (1,), jnp.float32, -bound, bound)

    out = mix_hist_rank(x, weight, bias, start_dim=start_dim, end_dim=end_dim)
    out = jax.block_until_ready(out)

    ref = _reference(x, weight, bias, start_dim=start_dim, end_dim=end_dim)
    inter_dim = start_dim + in_dim // 2
    assert out.shape == (L, B, E - (end_dim - inter_dim)), out.shape
    assert jnp.allclose(out, ref, atol=1e-4, rtol=1e-4), "mismatch vs reference"


if __name__ == "__main__":
    key = jax.random.PRNGKey(0)
    k1, k2 = jax.random.split(key)

    # Small shapes consistent with the module: [len x batch x embedding_size*n].
    _run_case(k1, L=8, B=2, E=32, start_dim=8, end_dim=24)
    # start_dim == 0 branch + row count (15) not a multiple of the tile:
    # exercises the ragged last block (garbage-in / dropped-write path).
    _run_case(k2, L=5, B=3, E=160, start_dim=0, end_dim=16)

    print("KERNEL_OK")
</pallas_src>

<mosaic_0001>
module attributes {stable_mosaic.version = 11 : i64} {
  func.func @_mix_hist_rank_kernel(%arg0: i32, %arg1: memref<8x32xf32, #tpu.memory_space<vmem>>, %arg2: memref<1x16xf32, #tpu.memory_space<vmem>>, %arg3: memref<1x1xf32, #tpu.memory_space<smem>>, %arg4: memref<8x24xf32, #tpu.memory_space<vmem>>) attributes {dimension_semantics = [#tpu.dimension_semantics<parallel>], iteration_bounds = array<i64: 2>, scalar_prefetch = 0 : i64, scratch_operands = 0 : i64, tpu.core_type = #tpu.core_type<tc>, window_params = [{transform_indices = @transform_0, window_bounds = array<i64: 8, 32>}, {pipeline_mode = #tpu.pipeline_mode<synchronous>, transform_indices = @transform_1, window_bounds = array<i64: 1, 16>}, {transform_indices = @transform_2, window_bounds = array<i64: 1, 1>}, {transform_indices = @transform_3, window_bounds = array<i64: 8, 24>}]} {
    %c0 = arith.constant 0 : index
    %c0_0 = arith.constant 0 : index
    %0 = vector.load %arg1[%c0, %c0_0] : memref<8x32xf32, #tpu.memory_space<vmem>>, vector<8x32xf32>
    %1 = vector.extract_strided_slice %0 {offsets = [0, 8], sizes = [8, 16], strides = [1, 1]} : vector<8x32xf32> to vector<8x16xf32>
    %c0_1 = arith.constant 0 : index
    %c0_2 = arith.constant 0 : index
    %2 = vector.load %arg2[%c0_1, %c0_2] : memref<1x16xf32, #tpu.memory_space<vmem>>, vector<1x16xf32>
    %3 = vector.broadcast %2 : vector<1x16xf32> to vector<8x16xf32>
    %4 = arith.mulf %1, %3 : vector<8x16xf32>
    %cst = arith.constant dense<0.000000e+00> : vector<8xf32>
    %5 = vector.multi_reduction <add>, %4, %cst [1] : vector<8x16xf32> to vector<8xf32>
    %6 = vector.shape_cast %5 : vector<8xf32> to vector<8x1xf32>
    %c0_3 = arith.constant 0 : index
    %c0_4 = arith.constant 0 : index
    %7 = memref.load %arg3[%c0_3, %c0_4] : memref<1x1xf32, #tpu.memory_space<smem>>
    %8 = vector.broadcast %7 : f32 to vector<8x1xf32>
    %9 = arith.addf %6, %8 : vector<8x1xf32>
    %10 = arith.negf %9 : vector<8x1xf32>
    %11 = math.exp %10 : vector<8x1xf32>
    %cst_5 = arith.constant 1.000000e+00 : f32
    %12 = vector.broadcast %cst_5 : f32 to vector<8x1xf32>
    %13 = arith.addf %12, %11 : vector<8x1xf32>
    %14 = arith.divf %12, %13 : vector<8x1xf32>
    %15 = tpu.iota {dimensions = array<i32: 1>} : vector<8x24xi32>
    %c8_i32 = arith.constant 8 : i32
    %16 = vector.broadcast %c8_i32 : i32 to vector<8x24xi32>
    %17 = arith.cmpi slt, %15, %16 : vector<8x24xi32>
    %c16_i32 = arith.constant 16 : i32
    %18 = vector.broadcast %c16_i32 : i32 to vector<8x24xi32>
    %19 = arith.cmpi slt, %15, %18 : vector<8x24xi32>
    %cst_6 = arith.constant 0.000000e+00 : f32
    %20 = vector.shape_cast %14 : vector<8x1xf32> to vector<8x1xf32>
    %21 = vector.broadcast %20 : vector<8x1xf32> to vector<8x24xf32>
    %22 = vector.broadcast %cst_6 : f32 to vector<8x24xf32>
    %23 = arith.select %19, %21, %22 : vector<8x24xi1>, vector<8x24xf32>
    %cst_7 = arith.constant 1.000000e+00 : f32
    %24 = vector.broadcast %cst_7 : f32 to vector<8x24xf32>
    %25 = arith.select %17, %24, %23 : vector<8x24xi1>, vector<8x24xf32>
    %26 = vector.extract_strided_slice %0 {offsets = [0, 0], sizes = [8, 24], strides = [1, 1]} : vector<8x32xf32> to vector<8x24xf32>
    %27 = vector.extract_strided_slice %0 {offsets = [0, 8], sizes = [8, 24], strides = [1, 1]} : vector<8x32xf32> to vector<8x24xf32>
    %28 = arith.subf %26, %27 : vector<8x24xf32>
    %29 = arith.mulf %25, %28 : vector<8x24xf32>
    %30 = arith.addf %27, %29 : vector<8x24xf32>
    %c0_8 = arith.constant 0 : index
    %c0_9 = arith.constant 0 : index
    %31 = vector.load %arg4[%c0_8, %c0_9] : memref<8x24xf32, #tpu.memory_space<vmem>>, vector<8x24xf32>
    tpu.vector_store %arg4[%c0_8, %c0_9], %30 {strides = array<i32>} : memref<8x24xf32, #tpu.memory_space<vmem>>, vector<8x24xf32>,
    return
  }
  func.func @transform_0(%arg0: i32) -> (i32, i32) {
    %c0_i32 = arith.constant 0 : i32
    %c0_i32_0 = arith.constant 0 : i32
    return %arg0, %c0_i32 : i32, i32
  }
  func.func @transform_1(%arg0: i32) -> (i32, i32) {
    %c0_i32 = arith.constant 0 : i32
    %c0_i32_0 = arith.constant 0 : i32
    %c0_i32_1 = arith.constant 0 : i32
    return %c0_i32, %c0_i32_0 : i32, i32
  }
  func.func @transform_2(%arg0: i32) -> (i32, i32) {
    %c0_i32 = arith.constant 0 : i32
    %c0_i32_0 = arith.constant 0 : i32
    %c0_i32_1 = arith.constant 0 : i32
    return %c0_i32, %c0_i32_0 : i32, i32
  }
  func.func @transform_3(%arg0: i32) -> (i32, i32) {
    %c0_i32 = arith.constant 0 : i32
    %c0_i32_0 = arith.constant 0 : i32
    return %arg0, %c0_i32 : i32, i32
  }
}

</mosaic_0001>

<bundles_post_ra>
// kernel: tpu_custom_call.1
= control target key start
LH: loop header
LB: loop body
LE: loop exit
PB: predicated region body
PF: predicated region fallthrough
CT: control target
= control target key end

     0   :  { %s683_s0 = inlined_call_operand.hbm [shape: f32[16,32], index: 0, kind: input, shape index: {}]   ;;  %s684_s1 = inlined_call_operand.vmem [shape: f32[1,16], index: 1, kind: input, shape index: {}]   ;;  %s685_s2 = inlined_call_operand.<no memory space> [shape: f32[1,1], index: 2, kind: input, shape index: {}]   ;;  %s686_s3 = inlined_call_operand.hbm [shape: f32[16,24], index: 3, kind: output, shape index: {}]  }
   0x1   :  { %8 = sst [smem:[#allocation2]] %s685_s2 }
   0x2   :  { %9 = vsyncpa [#allocation4], 0 }
   0x3   :  { %11 = vsyncpa [#allocation4 + $0x1], 0 }
   0x4   :  { %12 = vsyncpa [#allocation5], 0 }
   0x5   :  { %14 = vsyncpa [#allocation5 + $0x1], 0  ;;  %s513_s14 = smov 0   ;;  %s515_s15 = smov 0  }
   0x6   :  { %s517_s16 = smov 0   ;;  %s519_s17 = smov 0  }
   0x7 LB: > { %s534_s2 = sadd.s32 4294967295, %s484_s17   ;;  %s322_s18 = sadd.s32 4294967294, %s484_s17   ;;  %s484_s17 = sphi %s519_s17, %s701_s17   ;;  %s480_s16 = sphi %s517_s16, %s700_s16   ;;  %s476_s15 = sphi %s515_s15, %s699_s15   ;;  %s472_s14 = sphi %s513_s14, %s698_s14  }
   0x8   : > { %s538_s19 = sadd.s32 1, %s484_s17   ;;  %s27_s20 = sadd.s32 1, %s480_s16 }
   0x9   : > { %s24_s21 = ssub.s32 %s484_s17, %s538_s19  ;;  %p34_p0 = scmp.ne.s32.totalorder %s480_s16, %s476_s15 }
   0xa   : > { %p25_p1 = scmp.eq.s32.totalorder %s24_s21, 0  ;;  %p35_p2 = scmp.eq.s32.totalorder %s484_s17, 0 }
   0xb   : > { %p40_p3 = scmp.ne.s32.totalorder %s476_s15, %s472_s14  ;;  %p41_p4 = scmp.eq.s32.totalorder %s534_s2, 0 }
   0xc   : > { %s550_s22 = scalar_select %p25_p1, %s480_s16, %s27_s20  }
   0xd   : > { %p552_p5 = por %p35_p2, %p34_p0  ;;  %p556_p6 = por %p41_p4, %p40_p3 }
   0xe   : > { %p106_p7 = scmp.eq.s32.totalorder %s534_s2, 1  ;;  %p112_p8 = scmp.eq.s32.totalorder %s322_s18, 1 }
   0xf   : > { %p348_p10 = scmp.lt.s32.totalorder %s484_s17, 2  ;;  %s138_s27 = sand.u32 1, %s480_s16  }
  0x10   : > { %p563_p11 = por %p106_p7, %p34_p0  ;;  %p567_p12 = por %p112_p8, %p40_p3 }
  0x11   : > { %s326_s28 = sshll.u32 %s484_s17, 7  ;;  %s325_s29 = sshll.u32 %s138_s27, 3 }
  0x12   : > { %s690_s25 = scalar_select %p563_p11, 1, 0 }
  0x13   : > { %s691_s26 = scalar_select %p567_p12, 1, 0 }
  0x14   : > { %s576_s5 = scalar_lea.hbm %s683_s0, %s326_s28  ;;  %s142_s6 = scalar_lea.vmem [#allocation3], %s325_s29 }
  0x15   : > { %s149_s7 = sshll.u32 %s142_s6, 4  ;;  %p580_p13 = pnand %p348_p10, %p552_p5  ;;  %s584_s7 = int_to_ptr.vmem [resolvable:$true] %s149_s7 }
  0x16   : > { %s139_s9 = scalar_lea.sflag [#allocation4], %s138_s27  ;;  %s388_s10 = scalar_lea.hbm %s576_s5, 128 }
  0x17   : > { %p389_p2 = scmp.ne.s32.totalorder %s576_s5, %s388_s10  ;;  %p390_p3 = pneg %p580_p13 }
  0x18   : > { %s393_s13 = scalar_lea.hbm %s683_s0, 256  ;;  %p394_p5 = scmp.lt.u32.totalorder %s576_s5, %s683_s0 }
  0x19   : > { %p391_p4 = pnand %p390_p3, %p389_p2  ;;  %p395_p8 = scmp.lt.u32.totalorder %s393_s13, %s388_s10 }
  0x1a   : > { %p397_p9 = scmp.lt.u32.totalorder %s388_s10, %s576_s5 }
  0x1b   : > { %p392_p7 = pneg %p391_p4  ;;  %p396_p10 = por %p395_p8, %p394_p5 }
  0x1d   : > { %p398_p0 = por %p397_p9, %p396_p10 }
  0x1f   : > { %p399_p1 = pnand %p398_p0, %p392_p7 }
  0x21   : > { %402 = shalt.err (!%p399_p1)
}
  0x22   : > { %s403_s21 = scalar_lea.vmem %s584_s7, 128  ;;  %s486_s23 = smov [#allocation3]  }
  0x23   : > { %p404_p2 = scmp.ne.s32.totalorder %s584_s7, %s403_s21  ;;  %s408_s27 = sshll.u32 %s486_s23, 4  ;;  %s409_s27 = int_to_ptr.vmem [resolvable:$false] %s408_s27 }
  0x24   : > { %s410_s28 = scalar_lea.vmem %s409_s27, 256  ;;  %p411_p11 = scmp.lt.s32.totalorder %s584_s7, %s409_s27 }
  0x25   : > { %p406_p4 = pnand %p404_p2, %p390_p3  ;;  %p412_p5 = scmp.lt.s32.totalorder %s410_s28, %s403_s21 }
  0x27   : > { %p407_p12 = pneg %p406_p4  ;;  %p413_p8 = por %p412_p5, %p411_p11 }
  0x29   : > { %p414_p9 = pnand %p413_p8, %p407_p12 }
  0x2b   : > { %417 = shalt.err (!%p414_p9)
}
  0x2c   : > { %343 = dma.hbm_to_vmem [thread:$0]  (!%p580_p13), %s576_s5, 128, %s584_s7, %s139_s9  }
  0x2d   : > { %p693_p0 = scmp.lt.s32.totalorder %s484_s17, 3  ;;  %p694_p1 = scmp.ge.s32.totalorder %s484_s17, 1 }
  0x2f   : > { %p155_p3 = pnand %p694_p1, %p693_p0 }
  0x30   : > { %s618_s29 = sand.u32 (!%p155_p3), 1, %s476_s15  }
  0x31   : > { %158 = sbr.rel (%p155_p3) target bundleno = 711 (0x2c7), region = 32  ;;  %s328_s30 = sshll.u32 (!%p155_p3), %s618_s29, 3 }
  0x32   : > { %s161_s4 = scalar_lea.sflag (!%p155_p3), [#allocation4], %s618_s29  ;;  %s164_s6 = scalar_lea.vmem (!%p155_p3), [#allocation3], %s328_s30 }
  0x38   : > { %463 = dma.done.wait (%p556_p6), %s161_s4, 128  }
  0x39   : > { %465 = vsyncadd (%p556_p6), %s161_s4, 4294967168  ;;  %v330_v0 = vld [vmem:[%s684_s1] ss:$0 sm:$0xff]  ;;  %s487_s8 = smov 8   ;;  %s488_s9 = smov 120   ;;  %vm202_vm0 = vcmask 130048   ;;  %v215_v12 = vlaneseq }
  0x3a   : > { %194 = vrot.lane.b32.xlu0 %v330_v0, %s487_s8  ;;  %v187_v1 = vld [vmem:[%s164_s6] sm:$0xff]  ;;  %s206_s10 = sld [smem:[#allocation2]]  ;;  %s333_s24 = sshll.u32 %s534_s2, 7  ;;  %vm236_vm3 = vcmask 195584  }
  0x3b   : > { %v216_v13 = vand.u32 127, %v215_v12  ;;  %s186_s11 = scalar_lea.vmem [#allocation6], %s328_s30  ;;  %s639_s20 = scalar_lea.hbm %s686_s3, %s333_s24 }
  0x3c   : > { %s252_s12 = sshll.u32 %s186_s11, 4  ;;  %s239_s21 = scalar_lea.sflag [#allocation5], %s618_s29  ;;  %s641_s12 = int_to_ptr.vmem [resolvable:$true] %s252_s12 }
  0x3d   : > { %vm218_vm1 = vcmp.lt.s32.totalorder %v216_v13, 16  ;;  %vm217_vm2 = vcmp.lt.s32.totalorder %v216_v13, 8  ;;  %s418_s23 = scalar_lea.vmem %s641_s12, 128  ;;  %p695_p11 = scmp.ne.s32.totalorder %s690_s25, 0 }
  0x3e   : > { %p419_p6 = scmp.ne.s32.totalorder %s641_s12, %s418_s23  ;;  %s489_s2 = smov [#allocation6]  }
  0x3f   : > { %s422_s27 = sshll.u32 %s489_s2, 4  ;;  %s423_s27 = int_to_ptr.vmem [resolvable:$false] %s422_s27 }
  0x40   : > { %v207_v6 = vstv %s206_s10  ;;  %p420_p12 = pnand %p419_p6, %p695_p11  ;;  %s424_s28 = scalar_lea.vmem %s423_s27, 256 }
  0x41   : > { %p425_p7 = scmp.lt.s32.totalorder %s641_s12, %s423_s27  ;;  %p426_p10 = scmp.lt.s32.totalorder %s424_s28, %s418_s23 }
  0x42   : > { %p421_p13 = pneg %p420_p12 }
  0x43   : > { %p427_p2 = por %p426_p10, %p425_p7 }
  0x45   : > { %p428_p4 = pnand %p427_p2, %p421_p13 }
  0xac   : > { %v195_v2 = vpop.permute.xlu0 %194 }
  0xad   : > { %v197_v3 = vmul.f32 %v195_v2, %v187_v1 }
  0xaf   : > { %199 = vrot.lane.b32.xlu0 %v197_v3, %s488_s9 }
 0x121   : > { %v200_v4 = vpop.permute.xlu0 %199 }
 0x122   : > { %v203_v5 = vsel %vm202_vm0, %v200_v4, 0.0 }
 0x123   : > { %204 = vadd.xlane.f32.xlu1 %v203_v5 }
 0x134   : > { %222 = vrot.lane.b32.xlu1 %v187_v1, %s488_s9 }
 0x1b0   : > { %v205_v7 = vpop.xlane.xlu1 %204 }
 0x1b1   : > { %v208_v8 = vadd.f32 %v207_v6, %v205_v7 }
 0x1b3   : > { %v331_v9 = vmul.f32 -1.442695, %v208_v8 }
 0x1b4   : > { %v223_v14 = vpop.permute.xlu1 %222 }
 0x1b5   : > { %384 = vpow2.f32 %v331_v9  ;;  %v225_v15 = vsub.f32 %v187_v1, %v223_v14 }
 0x1bf   : > { %v385_v10 = vpop.eup %384 }
 0x1c0   : > { %v212_v11 = vadd.f32 1.0, %v385_v10 }
 0x1c2   : > { %386 = vrcp.f32 %v212_v11 }
 0x1cc   : > { %v387_v16 = vpop.eup %386 }
 0x1cd   : > { %v219_v17 = vsel %vm218_vm1, %v387_v16, 0.0 }
 0x1ce   : > { %v220_v18 = vsel %vm217_vm2, 1.0, %v219_v17 }
 0x1cf   : > { %v226_v19 = vmul.f32 %v225_v15, %v220_v18 }
 0x1d1   : > { %228 = vrot.lane.b32.xlu0 %v226_v19, %s487_s8 }
 0x243   : > { %v229_v20 = vpop.permute.xlu0 %228 }
 0x244   : > { %v231_v21 = vadd.f32 %v229_v20, %v187_v1 }
 0x246   : > { %233 = vrot.lane.b32.xlu0 %v231_v21, %s488_s9 }
 0x2b8   : > { %v234_v22 = vpop.permute.xlu0 %233 }
 0x2b9   : > { %237 = vst.msk [vmem:[%s186_s11] sm:$0xff] %vm236_vm3, %v234_v22 }
 0x2ba   : > { %431 = shalt.err (!%p428_p4)
}
 0x2bb   : > { %s432_s29 = scalar_lea.hbm %s639_s20, 128  ;;  %s436_s6 = scalar_lea.hbm %s686_s3, 256 }
 0x2bc   : > { %p433_p5 = scmp.ne.s32.totalorder %s639_s20, %s432_s29  ;;  %p437_p0 = scmp.lt.u32.totalorder %s639_s20, %s686_s3 }
 0x2bd   : > { %p438_p1 = scmp.lt.u32.totalorder %s436_s6, %s432_s29  ;;  %p440_p6 = scmp.lt.u32.totalorder %s432_s29, %s639_s20 }
 0x2be   : > { %p434_p8 = pnand %p433_p5, %p695_p11 }
 0x2bf   : > { %p439_p3 = por %p438_p1, %p437_p0 }
 0x2c0   : > { %p435_p9 = pneg %p434_p8 }
 0x2c1   : > { %p441_p12 = por %p440_p6, %p439_p3 }
 0x2c3   : > { %p442_p13 = pnand %p441_p12, %p435_p9 }
 0x2c5   : > { %445 = shalt.err (!%p442_p13)
}
 0x2c6   : > { %338 = dma.vmem_to_hbm [thread:$0]  (%p695_p11), %s641_s12, 128, %s639_s20, %s239_s21  }
 0x2c7 PF: > { %s264_s8 = sand.u32 1, %s472_s14   ;;  %p696_p7 = scmp.ne.s32.totalorder %s691_s26, 0 }
 0x2c8   : > { %p697_p10 = scmp.ge.s32.totalorder %s484_s17, 2  ;;  %s265_s9 = scalar_lea.sflag [#allocation5], %s264_s8 }
 0x2ca   : > { %p345_p2 = pnand %p697_p10, %p696_p7 }
 0x2cc   : > { %467 = dma.done.wait (!%p345_p2), %s265_s9, 128  }
 0x2cd   : > { %469 = vsyncadd (!%p345_p2), %s265_s9, 4294967168  ;;  %p17_p4 = scmp.ge.s32.totalorder %s538_s19, 4   ;;  %s698_s14 = smov %s476_s15 }
 0x2ce   : > { %s699_s15 = smov %s480_s16  ;;  %s700_s16 = smov %s550_s22 }
 0x2cf   : > { %s701_s17 = smov %s538_s19  ;;  %19 = sbr.rel (!%p17_p4) target bundleno = 7 (0x7), region = 77 }
 0x2d6   :  { %270 = vsyncpa [#allocation4], 1 }
 0x2d7   :  { %272 = vsyncpa [#allocation4 + $0x1], 1 }
 0x2d8   :  { %273 = vsyncpa [#allocation5], 1 }
 0x2d9   :  { %275 = vsyncpa [#allocation5 + $0x1], 1 }

</bundles_post_ra>
